<compile_context>
chip_gen: v5e
topology: v5e:2x2
jax: 0.10.0
libtpu: 0.0.40
codegen_flags: <defaults>
</compile_context>

<pallas_src>
import numpy as np
import jax
import jax.numpy as jnp
from jax import lax
from jax.experimental import pallas as pl
from jax.experimental.pallas import tpu as pltpu

WINDOW_SIZE = (4, 7)                          # gen_sample_grid default
NUM_PARTS = WINDOW_SIZE[0] * WINDOW_SIZE[1]   # 28
TILE_N = 128                                  # box tile (lane axis)
CHUNK = 4                                     # parts per inner chunk (vreg-bounded)
COUT_PAD = 32                                 # 28 -> 32: sublane-aligned conv output


# ---------------------------------------------------------------------------
# Kernel 1: conv3x3 (im2col matmul) -> BatchNorm (eval, folded) -> ReLU ->
# conv1x1.  Batch is folded into the lane axis; output (B, COUT_PAD, H, W)
# with channels [NUM_PARTS:] exactly zero.
# ---------------------------------------------------------------------------
def conv_bn_relu_conv(x_nchw, w1, bn_scale, bn_bias, w2):
    B, Cin, H, W = x_nchw.shape
    Cout = w1.shape[-1]
    HW = H * W
    NL = B * HW
    K = 9 * Cin

    # im2col (XLA glue), column order (ky, kx) major / cin minor, matching
    # w1.reshape(9*Cin, Cout) for HWIO weights; padding=1 (SAME).
    # TODO(synk): at detection-scale H*W replace the 9x im2col replication by
    # in-kernel shifted-dot accumulation to cut HBM read traffic (worst on v5e).
    x_pad = jnp.pad(x_nchw, ((0, 0), (0, 0), (1, 1), (1, 1)))
    x_pad = jnp.transpose(x_pad, (1, 0, 2, 3))            # (Cin, B, H+2, W+2)
    cols = jnp.concatenate(
        [x_pad[:, :, dy:dy + H, dx:dx + W].reshape(Cin, NL)
         for dy in range(3) for dx in range(3)], axis=0)  # (K, B*HW)

    # Fold BatchNorm2d (eval) scale into the 3x3 weights; pad Cout 28 -> 32.
    w1_f = w1.reshape(K, Cout) * bn_scale[None, :]
    w1_t = jnp.zeros((COUT_PAD, K), jnp.float32).at[:Cout].set(w1_f.T)
    bias = jnp.zeros((COUT_PAD, 1), jnp.float32).at[:Cout, 0].set(bn_bias)
    w2_t = jnp.zeros((COUT_PAD, COUT_PAD), jnp.float32).at[:Cout, :Cout].set(w2.T)
    # TODO(synk): for production sizes cast cols/w1_t/w2_t to bf16 on v6e/v7x
    # (keep preferred_element_type=f32); kept f32 here to hold the 2e-4 check.

    n_steps = 2 if NL % 256 == 0 else 1        # >=2 grid steps -> both v7x TCs
    tl = NL // n_steps

    def kernel(cols_ref, w1_ref, b_ref, w2_ref, o_ref):
        h = jnp.dot(w1_ref[...], cols_ref[...],
                    preferred_element_type=jnp.float32)    # (COUT_PAD, tl)
        h = jnp.maximum(h + b_ref[...], 0.0)               # BN bias + ReLU
        o_ref[...] = jnp.dot(w2_ref[...], h,
                             preferred_element_type=jnp.float32)

    out = pl.pallas_call(
        kernel,
        out_shape=jax.ShapeDtypeStruct((COUT_PAD, NL), jnp.float32),
        grid=(n_steps,),
        in_specs=[
            pl.BlockSpec((K, tl), lambda g: (0, g)),
            pl.BlockSpec((COUT_PAD, K), lambda g: (0, 0)),
            pl.BlockSpec((COUT_PAD, 1), lambda g: (0, 0)),
            pl.BlockSpec((COUT_PAD, COUT_PAD), lambda g: (0, 0)),
        ],
        out_specs=pl.BlockSpec((COUT_PAD, tl), lambda g: (0, g)),
        compiler_params=pltpu.CompilerParams(
            dimension_semantics=("parallel",)),
    )(cols, w1_t, bias, w2_t)

    # cheap XLA-side relayout to (B, COUT_PAD, H, W)
    feat = jnp.transpose(out.reshape(COUT_PAD, B, HW), (1, 0, 2))
    return feat.reshape(B, COUT_PAD, H, W)


# ---------------------------------------------------------------------------
# Kernel 2: rotated sample-grid generation + grid_sample(bilinear, zeros) +
# mean over parts, for ALL images' boxes in one gridded call.  Boxes are padded
# per image to a multiple of TILE_N; a per-tile image index (scalar prefetch,
# SMEM) selects the feature block.  Parts are processed in chunks of CHUNK to
# bound vreg live ranges; bilinear weights use the tent formulation.
# ---------------------------------------------------------------------------
def warp_score_batched(feat_bphw, boxes_t, tile_img, grid_offsets, spatial_scale):
    B, P_pad, H, W = feat_bphw.shape          # P_pad == COUT_PAD (32)
    n_pad = boxes_t.shape[1]
    num_tiles = n_pad // TILE_N
    P = NUM_PARTS                             # 28 real parts
    n_chunks = P // CHUNK                     # 7
    n_feat_chunks = P_pad // CHUNK            # 8 (last chunk is zero-padding)

    win0, win1 = WINDOW_SIZE
    lin0 = np.linspace(-0.5, 0.5, win0).astype(np.float32)
    lin1 = np.linspace(-0.5, 0.5, win1).astype(np.float32)
    # part k -> lin0[k // 7], lin1[k % 7]; grouped into chunks of CHUNK parts
    lin_x = jnp.asarray(np.repeat(lin0, win1).reshape(n_chunks, CHUNK, 1))
    lin_y = jnp.asarray(np.tile(lin1, win0).reshape(n_chunks, CHUNK, 1))

    # free reshape so one chunk of parts is indexable along a leading dim
    feat_r = feat_bphw.reshape(B, n_feat_chunks, CHUNK, H, W)

    off_x = float(grid_offsets[0])
    off_y = float(grid_offsets[1])
    ss = float(spatial_scale)
    # folded normalize/unnormalize chain: px = (x_rot + off_x)*ss*W/(W-1) - 0.5
    cx = ss * W / (W - 1.0)
    cy = ss * H / (H - 1.0)
    inv_p = 1.0 / P

    def kernel(img_ref, feat_ref, box_ref, lx_ref, ly_ref, o_ref):
        del img_ref  # only used by the index_maps
        xg = box_ref[0:1, :]                  # (1, N)
        yg = box_ref[1:2, :]
        wg = box_ref[2:3, :]
        lg = box_ref[3:4, :]
        rg = box_ref[4:5, :]
        cosT = jnp.cos(rg)
        sinT = jnp.sin(rg)
        bx = (xg + off_x) * cx - 0.5          # (1, N)
        by = (yg + off_y) * cy - 0.5

        # small 2-D-ish iotas, broadcast over the chunk dim (2 vregs each)
        iw = lax.broadcasted_iota(jnp.int32, (1, W, TILE_N), 1).astype(jnp.float32)
        ih = lax.broadcasted_iota(jnp.int32, (1, H, TILE_N), 1).astype(jnp.float32)

        def chunk_body(c, acc):
            lx = lx_ref[c]                    # (CHUNK, 1)
            ly = ly_ref[c]
            xx = lx * wg                      # (CHUNK, N)
            yy = ly * lg
            px = (xx * cosT + yy * sinT) * cx + bx     # (CHUNK, N)
            py = (yy * cosT - xx * sinT) * cy + by
            # tent bilinear weights == bilinear with zeros padding; corners
            # outside [0, W-1] / [0, H-1] get weight 0 automatically.
            wxm = jnp.maximum(0.0, 1.0 - jnp.abs(iw - px[:, None, :]))  # (C, W, N)
            wym = jnp.maximum(0.0, 1.0 - jnp.abs(ih - py[:, None, :]))  # (C, H, N)
            f = feat_ref[c]                   # (CHUNK, H, W)
            cols = jnp.einsum('chw,cwn->chn', f, wxm,
                              preferred_element_type=jnp.float32)       # (C, H, N)
            vals = jnp.sum(cols * wym, axis=1)          # (CHUNK, N)
            return acc + jnp.sum(vals, axis=0, keepdims=True)

        acc = lax.fori_loop(0, n_chunks, chunk_body,
                            jnp.zeros((1, TILE_N), jnp.float32), unroll=True)
        o_ref[...] = acc * inv_p              # mean over the 28 real parts

    out = pl.pallas_call(
        kernel,
        out_shape=jax.ShapeDtypeStruct((1, n_pad), jnp.float32),
        grid_spec=pltpu.PrefetchScalarGridSpec(
            num_scalar_prefetch=1,
            grid=(num_tiles,),
            in_specs=[
                # leading batch dim squeezed; index depends only on img[t], so
                # consecutive tiles of the same image reuse the resident block.
                pl.BlockSpec((None, n_feat_chunks, CHUNK, H, W),
                             lambda t, img: (img[t], 0, 0, 0, 0)),
                pl.BlockSpec((5, TILE_N), lambda t, img: (0, t)),
                pl.BlockSpec((n_chunks, CHUNK, 1), lambda t, img: (0, 0, 0)),
                pl.BlockSpec((n_chunks, CHUNK, 1), lambda t, img: (0, 0, 0)),
            ],
            out_specs=pl.BlockSpec((1, TILE_N), lambda t, img: (0, t)),
        ),
        compiler_params=pltpu.CompilerParams(
            dimension_semantics=("parallel",)),
    )(tile_img, feat_r, boxes_t, lin_x, lin_y)
    return out[0]


# ---------------------------------------------------------------------------
# PSWarpHead.forward
# ---------------------------------------------------------------------------
def ps_warp_head_forward(x_nchw, guided_anchors, params, grid_offsets,
                         featmap_stride):
    w1, bn_scale, bn_bias, w2 = params
    feat = conv_bn_relu_conv(x_nchw.astype(jnp.float32), w1, bn_scale, bn_bias,
                             w2)                                  # (B, 32, H, W)
    spatial_scale = 1.0 / featmap_stride

    # Batch all images' boxes: pad each image to a multiple of TILE_N so each
    # tile maps to exactly one image; record per-tile image index.  tile_img is
    # sorted by construction (all tiles of image i are contiguous).
    cols_idx = jnp.array([0, 1, 3, 4, 6])
    box_chunks, tile_img, pads = [], [], []
    for i, ga in enumerate(guided_anchors):
        n = int(ga.shape[0])
        if n == 0:
            pads.append(0)
            continue  # torch appends an empty tensor; cat drops it anyway
        n_pad = ((n + TILE_N - 1) // TILE_N) * TILE_N
        box_chunks.append(jnp.pad(ga[:, cols_idx], ((0, n_pad - n), (0, 0))))
        tile_img += [i] * (n_pad // TILE_N)
        pads.append(n_pad)
    if not box_chunks:
        return jnp.zeros((0,), jnp.float32)

    boxes_t = jnp.transpose(jnp.concatenate(box_chunks, axis=0))  # (5, N_pad)
    tile_img = jnp.asarray(np.array(tile_img, np.int32))

    scores_all = warp_score_batched(feat, boxes_t, tile_img, grid_offsets,
                                    spatial_scale)                # (N_pad,)

    # Strip per-image padding (glue) and concat in image order.
    out, off = [], 0
    for i, ga in enumerate(guided_anchors):
        n = int(ga.shape[0])
        if n == 0:
            continue
        out.append(scores_all[off:off + n])
        off += pads[i]
    return jnp.concatenate(out, axis=0)


# ---------------------------------------------------------------------------
# pure-JAX reference for correctness check
# ---------------------------------------------------------------------------
def _ref_forward(x_nchw, guided_anchors, params, grid_offsets, featmap_stride):
    w1, bn_scale, bn_bias, w2 = params
    x = jnp.transpose(x_nchw, (0, 2, 3, 1))
    y = lax.conv_general_dilated(x, w1, (1, 1), 'SAME',
                                 dimension_numbers=('NHWC', 'HWIO', 'NHWC'))
    y = jnp.maximum(y * bn_scale + bn_bias, 0.0)
    y = jnp.einsum('bhwc,cd->bhwd', y, w2)
    spatial_scale = 1.0 / featmap_stride
    win0, win1 = WINDOW_SIZE
    P = win0 * win1
    scores = []
    for i, ga in enumerate(guided_anchors):
        if ga.shape[0] == 0:
            continue
        feat = jnp.transpose(y[i], (2, 0, 1))
        _, H, W = feat.shape
        b = ga[:, jnp.array([0, 1, 3, 4, 6])]
        xg, yg, wg, lg, rg = [b[:, c] for c in range(5)]
        lx = jnp.linspace(-0.5, 0.5, win0)
        ly = jnp.linspace(-0.5, 0.5, win1)
        xx = lx[:, None, None] * wg[None, None, :]
        yy = ly[None, :, None] * lg[None, None, :]
        cosT, sinT = jnp.cos(rg), jnp.sin(rg)
        xs = ((xx * cosT + yy * sinT + xg) + grid_offsets[0]) * spatial_scale
        ys = ((yy * cosT - xx * sinT + yg) + grid_offsets[1]) * spatial_scale
        xs = xs.reshape(P, -1)
        ys = ys.reshape(P, -1)
        gx = xs / (W - 1) * 2 - 1
        gy = ys / (H - 1) * 2 - 1
        px = ((gx + 1) * W - 1) / 2
        py = ((gy + 1) * H - 1) / 2
        x0 = jnp.floor(px).astype(jnp.int32)
        y0 = jnp.floor(py).astype(jnp.int32)
        wx1, wy1 = px - x0, py - y0
        wx0, wy0 = 1 - wx1, 1 - wy1
        pk = jnp.arange(P)[:, None]

        def g(yi, xi):
            valid = (xi >= 0) & (xi < W) & (yi >= 0) & (yi < H)
            v = feat[pk, jnp.clip(yi, 0, H - 1), jnp.clip(xi, 0, W - 1)]
            return jnp.where(valid, v, 0.0)

        val = (g(y0, x0) * wy0 * wx0 + g(y0, x0 + 1) * wy0 * wx1
               + g(y0 + 1, x0) * wy1 * wx0 + g(y0 + 1, x0 + 1) * wy1 * wx1)
        scores.append(jnp.mean(val, axis=0))
    return jnp.concatenate(scores, axis=0)


if __name__ == "__main__":
    key = jax.random.PRNGKey(0)
    B, Cin, H, W = 2, 4, 16, 16
    num_class = 1
    num_parts = NUM_PARTS            # must equal win for grid_sample batching
    Cout = num_class * num_parts
    grid_offsets = (0.0, 0.0)
    featmap_stride = 1.0

    ks = jax.random.split(key, 10)
    x = jax.random.normal(ks[0], (B, Cin, H, W), jnp.float32)

    # Conv2d(3x3, no bias) -> BN2d(eps=1e-3, eval) -> ReLU -> Conv2d(1x1, no bias)
    w1 = 0.1 * jax.random.normal(ks[1], (3, 3, Cin, Cout), jnp.float32)   # HWIO
    gamma = 1.0 + 0.1 * jax.random.normal(ks[2], (Cout,), jnp.float32)
    beta = 0.1 * jax.random.normal(ks[3], (Cout,), jnp.float32)
    run_mean = 0.1 * jax.random.normal(ks[4], (Cout,), jnp.float32)
    run_var = 0.5 + 0.1 * jnp.abs(jax.random.normal(ks[5], (Cout,), jnp.float32))
    w2 = 0.1 * jax.random.normal(ks[6], (Cout, Cout), jnp.float32)
    # TODO(synk): BatchNorm2d is folded in eval mode (running stats); train-mode
    # batch statistics are not reproduced.
    bn_scale = gamma / jnp.sqrt(run_var + 1e-3)
    bn_bias = beta - run_mean * bn_scale
    params = (w1, bn_scale, bn_bias, w2)

    # guided anchors: list of (N_i, 7) boxes with columns x, y, z, w, l, h, r
    def make_boxes(k, n):
        ka, kb, kc, kd, ke = jax.random.split(k, 5)
        xy = jax.random.uniform(ka, (n, 2), minval=2.0, maxval=13.0)
        z = jax.random.uniform(kb, (n, 1), minval=-1.0, maxval=1.0)
        wl = jax.random.uniform(kc, (n, 2), minval=1.0, maxval=5.0)
        hh = jax.random.uniform(kd, (n, 1), minval=1.0, maxval=2.0)
        r = jax.random.uniform(ke, (n, 1), minval=-3.14, maxval=3.14)
        return jnp.concatenate([xy, z, wl, hh, r], axis=1).astype(jnp.float32)

    guided_anchors = [make_boxes(ks[7], 8), make_boxes(ks[8], 6)]

    out = ps_warp_head_forward(x, guided_anchors, params, grid_offsets,
                               featmap_stride)
    out = jax.block_until_ready(out)

    ref = _ref_forward(x, guided_anchors, params, grid_offsets, featmap_stride)
    np.testing.assert_allclose(np.asarray(out), np.asarray(ref),
                               rtol=2e-4, atol=2e-4)
    assert out.shape == (8 + 6,)
    print("KERNEL_OK")
</pallas_src>

<mosaic_0001>
module attributes {stable_mosaic.version = 11 : i64} {
  func.func @kernel(%arg0: i32, %arg1: memref<36x256xf32, #tpu.memory_space<vmem>>, %arg2: memref<32x36xf32, #tpu.memory_space<vmem>>, %arg3: memref<32x1xf32, #tpu.memory_space<vmem>>, %arg4: memref<32x32xf32, #tpu.memory_space<vmem>>, %arg5: memref<32x256xf32, #tpu.memory_space<vmem>>) attributes {dimension_semantics = [#tpu.dimension_semantics<parallel>], iteration_bounds = array<i64: 2>, scalar_prefetch = 0 : i64, scratch_operands = 0 : i64, tpu.core_type = #tpu.core_type<tc>, window_params = [{transform_indices = @transform_0, window_bounds = array<i64: 36, 256>}, {pipeline_mode = #tpu.pipeline_mode<synchronous>, transform_indices = @transform_1, window_bounds = array<i64: 32, 36>}, {pipeline_mode = #tpu.pipeline_mode<synchronous>, transform_indices = @transform_2, window_bounds = array<i64: 32, 1>}, {pipeline_mode = #tpu.pipeline_mode<synchronous>, transform_indices = @transform_3, window_bounds = array<i64: 32, 32>}, {transform_indices = @transform_4, window_bounds = array<i64: 32, 256>}]} {
    %c0 = arith.constant 0 : index
    %c0_0 = arith.constant 0 : index
    %0 = vector.load %arg2[%c0, %c0_0] : memref<32x36xf32, #tpu.memory_space<vmem>>, vector<32x36xf32>
    %c0_1 = arith.constant 0 : index
    %c0_2 = arith.constant 0 : index
    %1 = vector.load %arg1[%c0_1, %c0_2] : memref<36x256xf32, #tpu.memory_space<vmem>>, vector<36x256xf32>
    %cst = arith.constant dense<0.000000e+00> : vector<32x256xf32>
    %2 = tpu.matmul %0, %1, %cst {dimension_numbers = #tpu.dot_dimension_numbers<[1], [0], [0], [1], [0, 0, 1, 1], [], []>} : vector<32x36xf32>, vector<36x256xf32>, vector<32x256xf32> -> vector<32x256xf32>
    %c0_3 = arith.constant 0 : index
    %c0_4 = arith.constant 0 : index
    %3 = vector.load %arg3[%c0_3, %c0_4] : memref<32x1xf32, #tpu.memory_space<vmem>>, vector<32x1xf32>
    %4 = vector.broadcast %3 : vector<32x1xf32> to vector<32x256xf32>
    %5 = arith.addf %2, %4 : vector<32x256xf32>
    %cst_5 = arith.constant 0.000000e+00 : f32
    %6 = vector.broadcast %cst_5 : f32 to vector<32x256xf32>
    %7 = arith.maximumf %5, %6 : vector<32x256xf32>
    %c0_6 = arith.constant 0 : index
    %c0_7 = arith.constant 0 : index
    %8 = vector.load %arg4[%c0_6, %c0_7] : memref<32x32xf32, #tpu.memory_space<vmem>>, vector<32x32xf32>
    %cst_8 = arith.constant dense<0.000000e+00> : vector<32x256xf32>
    %9 = tpu.matmul %8, %7, %cst_8 {dimension_numbers = #tpu.dot_dimension_numbers<[1], [0], [0], [1], [0, 0, 1, 1], [], []>} : vector<32x32xf32>, vector<32x256xf32>, vector<32x256xf32> -> vector<32x256xf32>
    %c0_9 = arith.constant 0 : index
    %c0_10 = arith.constant 0 : index
    %10 = vector.load %arg5[%c0_9, %c0_10] : memref<32x256xf32, #tpu.memory_space<vmem>>, vector<32x256xf32>
    tpu.vector_store %arg5[%c0_9, %c0_10], %9 {strides = array<i32>} : memref<32x256xf32, #tpu.memory_space<vmem>>, vector<32x256xf32>,
    return
  }
  func.func @transform_0(%arg0: i32) -> (i32, i32) {
    %c0_i32 = arith.constant 0 : i32
    %c0_i32_0 = arith.constant 0 : i32
    return %c0_i32, %arg0 : i32, i32
  }
  func.func @transform_1(%arg0: i32) -> (i32, i32) {
    %c0_i32 = arith.constant 0 : i32
    %c0_i32_0 = arith.constant 0 : i32
    %c0_i32_1 = arith.constant 0 : i32
    return %c0_i32, %c0_i32_0 : i32, i32
  }
  func.func @transform_2(%arg0: i32) -> (i32, i32) {
    %c0_i32 = arith.constant 0 : i32
    %c0_i32_0 = arith.constant 0 : i32
    %c0_i32_1 = arith.constant 0 : i32
    return %c0_i32, %c0_i32_0 : i32, i32
  }
  func.func @transform_3(%arg0: i32) -> (i32, i32) {
    %c0_i32 = arith.constant 0 : i32
    %c0_i32_0 = arith.constant 0 : i32
    %c0_i32_1 = arith.constant 0 : i32
    return %c0_i32, %c0_i32_0 : i32, i32
  }
  func.func @transform_4(%arg0: i32) -> (i32, i32) {
    %c0_i32 = arith.constant 0 : i32
    %c0_i32_0 = arith.constant 0 : i32
    return %c0_i32, %arg0 : i32, i32
  }
}

</mosaic_0001>

<bundles_post_ra>
// kernel: tpu_custom_call.1
= control target key start
LH: loop header
LB: loop body
LE: loop exit
PB: predicated region body
PF: predicated region fallthrough
CT: control target
= control target key end

     0   :  { %9 = vsyncpa [#allocation3], 0  ;;  %s985_s0 = inlined_call_operand.hbm [shape: f32[36,512], index: 0, kind: input, shape index: {}]   ;;  %s986_s1 = inlined_call_operand.vmem [shape: f32[32,36], index: 1, kind: input, shape index: {}]   ;;  %s987_s2 = inlined_call_operand.vmem [shape: f32[32,1], index: 2, kind: input, shape index: {}]   ;;  %s988_s3 = inlined_call_operand.hbm [shape: f32[32,32], index: 3, kind: input, shape index: {}]   ;;  %s989_s4 = inlined_call_operand.hbm [shape: f32[32,512], index: 4, kind: output, shape index: {}]  }
   0x1   :  { %11 = vsyncpa [#allocation3 + $0x1], 0 }
   0x2   :  { %12 = vsyncpa [#allocation6], 0 }
   0x3   :  { %13 = vsyncpa [#allocation4], 0 }
   0x4   :  { %15 = vsyncpa [#allocation4 + $0x1], 0  ;;  %s814_s15 = smov 0   ;;  %s816_s16 = smov 0  }
   0x5   :  { %s818_s17 = smov 0   ;;  %s820_s18 = smov 0  }
   0x6 LB: > { %s835_s19 = sadd.s32 4294967295, %s777_s18   ;;  %s543_s20 = sadd.s32 4294967294, %s777_s18   ;;  %s777_s18 = sphi %s820_s18, %s999_s18   ;;  %s773_s17 = sphi %s818_s17, %s998_s17   ;;  %s769_s16 = sphi %s816_s16, %s997_s16   ;;  %s765_s15 = sphi %s814_s15, %s996_s15  }
   0x7   : > { %p41_p0 = scmp.ne.s32.totalorder %s769_s16, %s765_s15  ;;  %p42_p1 = scmp.eq.s32.totalorder %s835_s19, 0 }
   0x8   : > { %p128_p2 = scmp.eq.s32.totalorder %s835_s19, 1  ;;  %p134_p3 = scmp.eq.s32.totalorder %s543_s20, 1 }
   0x9   : > { %p844_p4 = por %p42_p1, %p41_p0  ;;  %p544_p5 = scmp.ge.s32.totalorder %s777_s18, 1 }
   0xa   : > { %p849_p6 = por %p134_p3, %p41_p0  ;;  %p141_p7 = scmp.lt.s32.totalorder %s777_s18, 3 }
   0xb   : > { %s158_s25 = sshll.u32 %s988_s3, 4  ;;  %s779_s27 = smov [#allocation5]   ;;  %s159_s25 = int_to_ptr.hbm [resolvable:$true] %s158_s25 }
   0xc   : > { %p857_p8 = pnand %p544_p5, %p141_p7  ;;  %s160_s28 = sshll.u32 %s779_s27, 4  ;;  %s161_s28 = int_to_ptr.vmem [resolvable:$true] %s160_s28 }
   0xd   : > { %s867_s29 = sadd.s32 1, %s777_s18   ;;  %s780_s30 = smov 128  }
   0xe   : > { %p587_p9 = pneg %p857_p8  ;;  %s781_s5 = smov 8  }
   0xf   : > { %s25_s6 = ssub.s32 %s777_s18, %s867_s29  ;;  %s28_s7 = sadd.s32 1, %s773_s17 }
  0x10   : > { %p588_p10 = pnand %p587_p9, %p42_p1  ;;  %p26_p12 = scmp.eq.s32.totalorder %s25_s6, 0 }
  0x11   : > { %p35_p13 = scmp.ne.s32.totalorder %s773_s17, %s769_s16  ;;  %p36_p0 = scmp.eq.s32.totalorder %s777_s18, 0 }
  0x12   : > { %590 = dma.hbm_to_vmem [thread:$0]  (!%p588_p10), %s159_s25, 512, %s161_s28, [#allocation6], %s780_s30, %s780_s30, %s781_s5  }
  0x13   : > { %p600_p3 = scmp.lt.s32.totalorder %s777_s18, 2  ;;  %p37_p5 = por %p36_p0, %p35_p13 }
  0x14   : > { %s877_s8 = scalar_select %p26_p12, %s773_s17, %s28_s7  }
  0x15   : > { %p881_p7 = por %p128_p2, %p35_p13  ;;  %s174_s10 = sand.u32 1, %s773_s17  }
  0x16   : > { %s575_s11 = sshll.u32 %s777_s18, 4  ;;  %s577_s12 = smul.u32 80, %s174_s10 }
  0x17   : > { %s183_s20 = scalar_lea.hbm %s985_s0, %s575_s11  ;;  %p890_p9 = pnand %p600_p3, %p37_p5 }
  0x18   : > { %s184_s24 = sshll.u32 %s183_s20, 4  ;;  %s178_s25 = scalar_lea.vmem [#allocation2], %s577_s12  ;;  %s185_s24 = int_to_ptr.hbm [resolvable:$true] %s184_s24 }
  0x19   : > { %s186_s27 = sshll.u32 %s178_s25, 4  ;;  %s175_s28 = scalar_lea.sflag [#allocation3], %s174_s10  ;;  %s187_s27 = int_to_ptr.vmem [resolvable:$true] %s186_s27 }
  0x1a   : > { %s677_s30 = sshra.s32 %s185_s24, 4  ;;  %p681_p10 = pneg %p890_p9  ;;  %s678_s30 = int_to_ptr.hbm [resolvable:$true] %s677_s30 }
  0x1b   : > { %s679_s5 = scalar_lea.hbm %s678_s30, 80  ;;  %s684_s11 = scalar_lea.hbm %s985_s0, 160 }
  0x1c   : > { %p680_p2 = scmp.ne.s32.totalorder %s678_s30, %s679_s5  ;;  %p685_p0 = scmp.lt.s32.totalorder %s678_s30, %s985_s0 }
  0x1d   : > { %p686_p3 = scmp.lt.s32.totalorder %s684_s11, %s679_s5 }
  0x1e   : > { %p682_p12 = pnand %p681_p10, %p680_p2 }
  0x1f   : > { %p687_p5 = por %p686_p3, %p685_p0 }
  0x20   : > { %p683_p13 = pneg %p682_p12 }
  0x22   : > { %p688_p11 = pnand %p687_p5, %p683_p13 }
  0x24   : > { %691 = shalt.err (!%p688_p11)
}
  0x25   : > { %s782_s10 = smov 512   ;;  %s783_s12 = smov 256  }
  0x26   : > { %s784_s20 = smov 16   ;;  %198 = sbr.rel (%p857_p8) target bundleno = 381 (0x17d), region = 36 }
  0x27   : > { %594 = dma.hbm_to_vmem [thread:$0]  (!%p890_p9), %s185_s24, 1280, %s187_s27, %s175_s28, %s782_s10, %s783_s12, %s784_s20  }
  0x28   : > { %s907_s25 = sand.u32 (!%p857_p8), 1, %s769_s16  }
  0x29   : > { %s578_s30 = smul.u32 (!%p857_p8), 80, %s907_s25  ;;  %s201_s5 = scalar_lea.sflag (!%p857_p8), [#allocation3], %s907_s25 }
  0x2b   : > { %s204_s6 = scalar_lea.vmem [#allocation2], %s578_s30 }
  0x2c   : > { %752 = dma.done.wait (%p844_p4), %s201_s5, 1280  }
  0x2d   : > { %754 = vsyncadd (%p844_p4), %s201_s5, 4294966016 }
  0x2e   : > { %756 = dma.done.wait (%p42_p1), [#allocation6], 512  }
  0x2f   : > { %758 = vsyncadd (%p42_p1), [#allocation6], 4294966784  ;;  %v785_v0 = vmov 0   ;;  %vm288_vm0 = vcmask 1043456   ;;  %v249_v1 = vld [vmem:[%s204_s6 + $0x40] sm:$0xf] }
  0x30   : > { %646 = vset.pattern.permute.xlu1 %v785_v0  ;;  %645 = vset.pattern.permute.xlu0 %v785_v0  ;;  %v250_v2 = vld [vmem:[%s204_s6 + $0x48] sm:$0xf]  ;;  %v247_v3 = vld [vmem:[%s204_s6 + $0x30] sm:$0xff]  ;;  %v248_v4 = vld [vmem:[%s204_s6 + $0x38] sm:$0xff]  ;;  %vm275_vm1 = vcmask 293888   ;;  %vm365_vm2 = vcmask 261120  }
  0x31   : > { %552 = vmatpush.msk.msra.mxu0 %vm288_vm0, %v249_v1  ;;  %557 = vmatpush.msk.msra.mxu1 %vm288_vm0, %v250_v2  ;;  %v245_v5 = vld [vmem:[%s204_s6 + $0x20] sm:$0xff]  ;;  %v246_v6 = vld [vmem:[%s204_s6 + $0x28] sm:$0xff]  ;;  %v243_v8 = vld [vmem:[%s204_s6 + $0x10] sm:$0xff]  ;;  %s551_s21 = sshll.u32 %s907_s25, 6  ;;  %s576_s23 = sshll.u32 %s835_s19, 4 }
  0x32   : > { %v252_v7 = vld [vmem:[%s987_s2 + $0x8] sm:$0xff]  ;;  %v254_v10 = vld [vmem:[%s987_s2 + $0x18] sm:$0xff]  ;;  %v241_v11 = vld [vmem:[%s204_s6] sm:$0xff]  ;;  %s234_s26 = scalar_lea.vmem [#allocation7], %s551_s21  ;;  %s456_s28 = scalar_lea.hbm %s989_s4, %s576_s23 }
  0x33   : > { %307 = vmatpush.msra.mxu0 %v247_v3  ;;  %336 = vmatpush.msra.mxu1 %v248_v4  ;;  %v244_v9 = vld [vmem:[%s204_s6 + $0x18] sm:$0xff]  ;;  %v242_v12 = vld [vmem:[%s204_s6 + $0x8] sm:$0xff]  ;;  %v237_v13 = vld [vmem:[%s986_s1] sm:$0xff]  ;;  %s457_s7 = sshll.u32 %s234_s26, 4  ;;  %s459_s11 = sshll.u32 %s456_s28, 4  ;;  %s458_s7 = int_to_ptr.vmem [resolvable:$true] %s457_s7  ;;  %s460_s11 = int_to_ptr.hbm [resolvable:$true] %s459_s11 }
  0x34   : > { %262 = vperm.xlu1 %646, %v252_v7   ;;  %272 = vperm.xlu0 %645, %v254_v10   ;;  %v251_v14 = vld [vmem:[%s987_s2] sm:$0xff]  ;;  %v253_v15 = vld [vmem:[%s987_s2 + $0x10] sm:$0xff]  ;;  %v238_v16 = vld [vmem:[%s986_s1 + $0x8] sm:$0xff]  ;;  %s445_s13 = scalar_lea.sflag [#allocation4], %s907_s25  ;;  %s721_s14 = sshra.s32 %s460_s11, 4  ;;  %s722_s14 = int_to_ptr.hbm [resolvable:$true] %s721_s14 }
  0x35   : > { %308 = vmatpush.msra.mxu0 %v245_v5  ;;  %337 = vmatpush.msra.mxu1 %v246_v6  ;;  %v239_v17 = vld [vmem:[%s986_s1 + $0x10] sm:$0xff]  ;;  %v240_v18 = vld [vmem:[%s986_s1 + $0x18] sm:$0xff]  ;;  %v361_v47 = vld [vmem:[#allocation5] sm:$0xff]  ;;  %s723_s19 = scalar_lea.hbm %s722_s14, 64  ;;  %s727_s20 = scalar_lea.hbm %s989_s4, 128 }
  0x36   : > { %v362_v48 = vld [vmem:[#allocation5 + $0x8] sm:$0xff]  ;;  %v363_v49 = vld [vmem:[#allocation5 + $0x10] sm:$0xff]  ;;  %v364_v50 = vld [vmem:[#allocation5 + $0x18] sm:$0xff]  ;;  %p724_p1 = scmp.ne.s32.totalorder %s722_s14, %s723_s19  ;;  %p728_p11 = scmp.lt.s32.totalorder %s722_s14, %s989_s4 }
  0x37   : > { %309 = vmatpush.msra.mxu0 %v243_v8  ;;  %338 = vmatpush.msra.mxu1 %v244_v9  ;;  %p729_p9 = scmp.lt.s32.totalorder %s727_s20, %s723_s19 }
  0x38   : > { %p725_p4 = pnand %p724_p1, %p881_p7 }
  0x39   : > { %310 = vmatpush.msra.mxu0 %v241_v11  ;;  %339 = vmatpush.msra.mxu1 %v242_v12  ;;  %p730_p2 = por %p729_p9, %p728_p11 }
  0x3a   : > { %553 = vmatmul.msk.f32.vlgmr.msra.gmra.mxu0 %vm275_vm1, %v237_v13  ;;  %558 = vmatmul.msk.f32.vlgmr.msra.gmra.mxu1 %vm275_vm1, %v237_v13  ;;  %p726_p8 = pneg %p725_p4 }
  0x3c   : > { %257 = vperm.xlu1 %646, %v251_v14   ;;  %267 = vperm.xlu0 %645, %v253_v15   ;;  %p731_p10 = pnand %p730_p2, %p726_p8 }
  0x42   : > { %554 = vmatmul.msk.f32.gmra.mxu0 %vm275_vm1, %v238_v16  ;;  %559 = vmatmul.msk.f32.gmra.mxu1 %vm275_vm1, %v238_v16 }
  0x4a   : > { %555 = vmatmul.msk.f32.gmra.mxu0 %vm275_vm1, %v239_v17  ;;  %560 = vmatmul.msk.f32.gmra.mxu1 %vm275_vm1, %v239_v17 }
  0x52   : > { %556 = vmatmul.msk.f32.gmra.mxu0 %vm275_vm1, %v240_v18  ;;  %561 = vmatmul.msk.f32.gmra.mxu1 %vm275_vm1, %v240_v18 }
  0xa6   : > { %v273_v23 = vpop.permute.xlu0 %272  ;;  %v263_v24 = vpop.permute.xlu1 %262 }
  0xae   : > { %v268_v27 = vpop.permute.xlu0 %267  ;;  %v258_v34 = vpop.permute.xlu1 %257 }
  0xb7   : > { %v312_v19 = vpop.f32.mrf.mxu0  ;;  %v341_v20 = vpop.f32.mrf.mxu1 }
  0xb8   : > { %v313_v39 = vadd.f32 %v312_v19, %v258_v34  ;;  %v342_v40 = vadd.f32 %v341_v20, %v258_v34 }
  0xba   : > { %v353_v45 = vmax.f32 %v313_v39, 0.0  ;;  %v354_v46 = vmax.f32 %v342_v40, 0.0 }
  0xbf   : > { %v315_v21 = vpop.f32.mrf.mxu0  ;;  %v344_v22 = vpop.f32.mrf.mxu1 }
  0xc0   : > { %v316_v35 = vadd.f32 %v315_v21, %v263_v24  ;;  %v345_v36 = vadd.f32 %v344_v22, %v263_v24 }
  0xc2   : > { %v355_v43 = vmax.f32 %v316_v35, 0.0  ;;  %v356_v44 = vmax.f32 %v345_v36, 0.0 }
  0xc7   : > { %v318_v25 = vpop.f32.mrf.mxu0  ;;  %v347_v26 = vpop.f32.mrf.mxu1 }
  0xc8   : > { %v319_v30 = vadd.f32 %v318_v25, %v268_v27  ;;  %v348_v31 = vadd.f32 %v347_v26, %v268_v27 }
  0xca   : > { %v357_v41 = vmax.f32 %v319_v30, 0.0  ;;  %v358_v42 = vmax.f32 %v348_v31, 0.0 }
  0xcf   : > { %v321_v28 = vpop.f32.mrf.mxu0  ;;  %v350_v29 = vpop.f32.mrf.mxu1 }
  0xd0   : > { %v322_v32 = vadd.f32 %v321_v28, %v273_v23  ;;  %v351_v33 = vadd.f32 %v350_v29, %v273_v23 }
  0xd2   : > { %v359_v37 = vmax.f32 %v322_v32, 0.0  ;;  %v360_v38 = vmax.f32 %v351_v33, 0.0 }
  0xd4   : > { %390 = vmatpush.msra.mxu2 %v359_v37  ;;  %419 = vmatpush.msra.mxu3 %v360_v38 }
  0xd6   : > { %391 = vmatpush.msra.mxu2 %v357_v41  ;;  %420 = vmatpush.msra.mxu3 %v358_v42 }
  0xd8   : > { %392 = vmatpush.msra.mxu2 %v355_v43  ;;  %421 = vmatpush.msra.mxu3 %v356_v44 }
  0xda   : > { %393 = vmatpush.msra.mxu2 %v353_v45  ;;  %422 = vmatpush.msra.mxu3 %v354_v46 }
  0xdb   : > { %562 = vmatmul.msk.f32.vlgmr.msra.gmra.mxu2 %vm365_vm2, %v361_v47  ;;  %566 = vmatmul.msk.f32.vlgmr.msra.gmra.mxu3 %vm365_vm2, %v361_v47 }
  0xe3   : > { %563 = vmatmul.msk.f32.gmra.mxu2 %vm365_vm2, %v362_v48  ;;  %567 = vmatmul.msk.f32.gmra.mxu3 %vm365_vm2, %v362_v48 }
  0xeb   : > { %564 = vmatmul.msk.f32.gmra.mxu2 %vm365_vm2, %v363_v49  ;;  %568 = vmatmul.msk.f32.gmra.mxu3 %vm365_vm2, %v363_v49 }
  0xf3   : > { %565 = vmatmul.msk.f32.gmra.mxu2 %vm365_vm2, %v364_v50  ;;  %569 = vmatmul.msk.f32.gmra.mxu3 %vm365_vm2, %v364_v50 }
 0x15e   : > { %v395_v51 = vpop.f32.mrf.mxu2  ;;  %v424_v52 = vpop.f32.mrf.mxu3 }
 0x15f   : > { %436 = vst [vmem:[%s234_s26] sm:$0xff] %v395_v51 }
 0x160   : > { %437 = vst [vmem:[%s234_s26 + $0x8] sm:$0xff] %v424_v52 }
 0x166   : > { %v398_v53 = vpop.f32.mrf.mxu2  ;;  %v427_v54 = vpop.f32.mrf.mxu3 }
 0x167   : > { %438 = vst [vmem:[%s234_s26 + $0x10] sm:$0xff] %v398_v53 }
 0x168   : > { %439 = vst [vmem:[%s234_s26 + $0x18] sm:$0xff] %v427_v54 }
 0x16e   : > { %v401_v55 = vpop.f32.mrf.mxu2  ;;  %v430_v56 = vpop.f32.mrf.mxu3 }
 0x16f   : > { %440 = vst [vmem:[%s234_s26 + $0x20] sm:$0xff] %v401_v55 }
 0x170   : > { %441 = vst [vmem:[%s234_s26 + $0x28] sm:$0xff] %v430_v56 }
 0x176   : > { %v404_v57 = vpop.f32.mrf.mxu2  ;;  %v433_v58 = vpop.f32.mrf.mxu3 }
 0x177   : > { %442 = vst [vmem:[%s234_s26 + $0x30] sm:$0xff] %v404_v57 }
 0x178   : > { %443 = vst [vmem:[%s234_s26 + $0x38] sm:$0xff] %v433_v58 }
 0x179   : > { %734 = shalt.err (!%p731_p10)
}
 0x17a   : > { %s786_s25 = smov 256   ;;  %s787_s6 = smov 512  }
 0x17b   : > { %s788_s21 = smov 16  }
 0x17c   : > { %585 = dma.vmem_to_hbm [thread:$0]  (%p881_p7), %s458_s7, 1024, %s460_s11, %s445_s13, %s786_s25, %s787_s6, %s788_s21  }
 0x17d PF: > { %s474_s26 = sand.u32 1, %s765_s15   ;;  %p995_p12 = scmp.ge.s32.totalorder %s777_s18, 2 }
 0x17e   : > { %s475_s23 = scalar_lea.sflag [#allocation4], %s474_s26 }
 0x17f   : > { %p596_p13 = pnand %p995_p12, %p849_p6 }
 0x181   : > { %p597_p0 = pneg %p596_p13 }
 0x183   : > { %760 = dma.done.wait (%p597_p0), %s475_s23, 1024  }
 0x184   : > { %762 = vsyncadd (%p597_p0), %s475_s23, 4294966272  ;;  %p18_p3 = scmp.ge.s32.totalorder %s867_s29, 4   ;;  %s996_s15 = smov %s769_s16 }
 0x185   : > { %s997_s16 = smov %s773_s17  ;;  %s998_s17 = smov %s877_s8 }
 0x186   : > { %s999_s18 = smov %s867_s29  ;;  %20 = sbr.rel (!%p18_p3) target bundleno = 6 (0x6), region = 85 }
 0x18b   :  { %481 = vsyncpa [#allocation3], 1 }
 0x18c   :  { %483 = vsyncpa [#allocation3 + $0x1], 1 }
 0x18d   :  { %484 = vsyncpa [#allocation6], 1 }
 0x18e   :  { %485 = vsyncpa [#allocation4], 1 }
 0x18f   :  { %487 = vsyncpa [#allocation4 + $0x1], 1 }

</bundles_post_ra>
